<compile_context>
chip_gen: v6e
topology: v6e:2x2x1
jax: 0.10.0
libtpu: 0.0.40
codegen_flags: <defaults>
</compile_context>

<pallas_src>
import numpy as np
import jax
import jax.numpy as jnp
from jax.experimental import pallas as pl
from jax.experimental.pallas import tpu as pltpu

# ----- config (synthetic stand-in for H2/config.py) -----
NUM_SENSORS = 16
HIDDEN_SIZE = 32
NUM_OUTPUTS = 8

LANE = 128      # padded hidden width (VMEM-only intermediate)
TM_MAX = 4096   # max batch-tile rows


def brain_kernel(x_ref, w1t_ref, b1_ref, w2t_ref, b2_ref, o_ref):
    # x: (TM, 16), w1t: (16, 128), b1: (1, 128), w2t: (128, 8), b2: (1, 8)
    x = x_ref[...]
    h = jnp.tanh(
        jnp.dot(x, w1t_ref[...], preferred_element_type=jnp.float32) + b1_ref[...]
    )  # (TM, 128); cols >= HIDDEN_SIZE are tanh(0) = 0
    o = jnp.tanh(
        jnp.dot(h, w2t_ref[...], preferred_element_type=jnp.float32) + b2_ref[...]
    )  # (TM, 8)
    o_ref[...] = o.astype(o_ref.dtype)


def prepare_brain_params(W1, b1, W2, b2):
    """One-time weight prep: transpose + zero-pad.

    W1: (H, S), b1: (H,), W2: (O, H), b2: (O,)  ->
      w1t_pad: (S, 128)  with W1.T in [:, :H]
      b1_pad : (1, 128)  with b1 in [:, :H]
      w2t_pad: (128, O)  with W2.T in [:H, :]
      b2_pad : (1, O)
    """
    w1t = np.zeros((NUM_SENSORS, LANE), np.float32)
    w1t[:, :HIDDEN_SIZE] = np.asarray(W1, np.float32).T
    b1p = np.zeros((1, LANE), np.float32)
    b1p[0, :HIDDEN_SIZE] = np.asarray(b1, np.float32)
    w2t = np.zeros((LANE, NUM_OUTPUTS), np.float32)
    w2t[:HIDDEN_SIZE, :] = np.asarray(W2, np.float32).T
    b2p = np.asarray(b2, np.float32).reshape(1, NUM_OUTPUTS)
    return (jnp.asarray(w1t), jnp.asarray(b1p), jnp.asarray(w2t), jnp.asarray(b2p))


def _round_up(x, m):
    return ((x + m - 1) // m) * m


def _batch_tiling(B):
    """Choose (tile_rows, padded_batch, num_tiles) for a static batch B."""
    if B <= 128:
        n_tiles = 1
        tm = max(8, _round_up(B, 8))
    else:
        # >= 2 grid steps so the "parallel" axis shards across both TCs (v7x);
        # cap the tile so VMEM stays small and padding waste stays < 8*n rows.
        n_tiles = max(2, pl.cdiv(B, TM_MAX))
        tm = _round_up(pl.cdiv(B, n_tiles), 8)
    return tm, tm * n_tiles, n_tiles


@jax.jit
def brain_forward(x, params):
    """x: (B, NUM_SENSORS); params from prepare_brain_params()."""
    w1t, b1p, w2t, b2p = params
    B = x.shape[0]
    tm, B_pad, n_tiles = _batch_tiling(B)   # static under jit

    x = x.astype(jnp.float32)
    if B_pad != B:
        x = jnp.pad(x, ((0, B_pad - B), (0, 0)))   # cheap narrow row-pad only

    out = pl.pallas_call(
        brain_kernel,
        out_shape=jax.ShapeDtypeStruct((B_pad, NUM_OUTPUTS), jnp.float32),
        grid=(n_tiles,),
        in_specs=[
            pl.BlockSpec((tm, NUM_SENSORS), lambda i: (i, 0)),        # x tile
            pl.BlockSpec((NUM_SENSORS, LANE), lambda i: (0, 0)),      # W1.T (resident)
            pl.BlockSpec((1, LANE), lambda i: (0, 0)),                # b1
            pl.BlockSpec((LANE, NUM_OUTPUTS), lambda i: (0, 0)),      # W2.T (resident)
            pl.BlockSpec((1, NUM_OUTPUTS), lambda i: (0, 0)),         # b2
        ],
        out_specs=pl.BlockSpec((tm, NUM_OUTPUTS), lambda i: (i, 0)),
        compiler_params=pltpu.CompilerParams(
            dimension_semantics=("parallel",),   # shards over 2 TCs on v7x
        ),
    )(x, w1t, b1p, w2t, b2p)

    return out if B_pad == B else out[:B]


def unpack_genome(genome: np.ndarray):
    """Replicates Brain.__init__ genome slicing."""
    i = 0
    sz_w1 = HIDDEN_SIZE * NUM_SENSORS
    W1 = genome[i:i + sz_w1].reshape(HIDDEN_SIZE, NUM_SENSORS); i += sz_w1
    b1 = genome[i:i + HIDDEN_SIZE]; i += HIDDEN_SIZE
    sz_w2 = NUM_OUTPUTS * HIDDEN_SIZE
    W2 = genome[i:i + sz_w2].reshape(NUM_OUTPUTS, HIDDEN_SIZE); i += sz_w2
    b2 = genome[i:i + NUM_OUTPUTS]; i += NUM_OUTPUTS
    return W1, b1, W2, b2


def _reference(x, W1, b1, W2, b2):
    x = jnp.asarray(x, jnp.float32)
    h = jnp.tanh(x @ jnp.asarray(W1, jnp.float32).T + jnp.asarray(b1, jnp.float32))
    return jnp.tanh(h @ jnp.asarray(W2, jnp.float32).T + jnp.asarray(b2, jnp.float32))


if __name__ == "__main__":
    key = jax.random.PRNGKey(0)
    k_genome, k_x_small, k_x_big = jax.random.split(key, 3)

    genome_len = (HIDDEN_SIZE * NUM_SENSORS + HIDDEN_SIZE
                  + NUM_OUTPUTS * HIDDEN_SIZE + NUM_OUTPUTS)
    genome = np.asarray(
        jax.random.uniform(k_genome, (genome_len,), jnp.float32, -1.0, 1.0)
    )
    W1, b1, W2, b2 = unpack_genome(genome)

    # one-time weight prep (hoisted out of the per-call path)
    params = prepare_brain_params(W1, b1, W2, b2)

    # small-batch check (matches the original module usage; single 8-row tile)
    batch = 4
    x = jax.random.normal(k_x_small, (batch, NUM_SENSORS), jnp.float32)
    out = brain_forward(x, params)
    jax.block_until_ready(out)
    assert out.shape == (batch, NUM_OUTPUTS)
    np.testing.assert_allclose(
        np.asarray(out), np.asarray(_reference(x, W1, b1, W2, b2)),
        atol=1e-5, rtol=1e-5)

    # larger "many agents" batch: 2 grid steps + ragged row padding
    big_batch = 300
    xb = jax.random.normal(k_x_big, (big_batch, NUM_SENSORS), jnp.float32)
    out_b = brain_forward(xb, params)
    jax.block_until_ready(out_b)
    assert out_b.shape == (big_batch, NUM_OUTPUTS)
    np.testing.assert_allclose(
        np.asarray(out_b), np.asarray(_reference(xb, W1, b1, W2, b2)),
        atol=1e-5, rtol=1e-5)

    print("KERNEL_OK")
</pallas_src>

<mosaic_0001>
module attributes {stable_mosaic.version = 11 : i64} {
  func.func @brain_kernel(%arg0: i32, %arg1: memref<8x16xf32, #tpu.memory_space<vmem>>, %arg2: memref<16x128xf32, #tpu.memory_space<vmem>>, %arg3: memref<1x128xf32, #tpu.memory_space<vmem>>, %arg4: memref<128x8xf32, #tpu.memory_space<vmem>>, %arg5: memref<1x8xf32, #tpu.memory_space<vmem>>, %arg6: memref<8x8xf32, #tpu.memory_space<vmem>>) attributes {dimension_semantics = [#tpu.dimension_semantics<parallel>], iteration_bounds = array<i64: 1>, scalar_prefetch = 0 : i64, scratch_operands = 0 : i64, tpu.core_type = #tpu.core_type<tc>, window_params = [{transform_indices = @transform_0, window_bounds = array<i64: 8, 16>}, {pipeline_mode = #tpu.pipeline_mode<synchronous>, transform_indices = @transform_1, window_bounds = array<i64: 16, 128>}, {pipeline_mode = #tpu.pipeline_mode<synchronous>, transform_indices = @transform_2, window_bounds = array<i64: 1, 128>}, {pipeline_mode = #tpu.pipeline_mode<synchronous>, transform_indices = @transform_3, window_bounds = array<i64: 128, 8>}, {pipeline_mode = #tpu.pipeline_mode<synchronous>, transform_indices = @transform_4, window_bounds = array<i64: 1, 8>}, {transform_indices = @transform_5, window_bounds = array<i64: 8, 8>}]} {
    %c0 = arith.constant 0 : index
    %c0_0 = arith.constant 0 : index
    %0 = vector.load %arg1[%c0, %c0_0] : memref<8x16xf32, #tpu.memory_space<vmem>>, vector<8x16xf32>
    %c0_1 = arith.constant 0 : index
    %c0_2 = arith.constant 0 : index
    %1 = vector.load %arg2[%c0_1, %c0_2] : memref<16x128xf32, #tpu.memory_space<vmem>>, vector<16x128xf32>
    %cst = arith.constant dense<0.000000e+00> : vector<8x128xf32>
    %2 = tpu.matmul %0, %1, %cst {dimension_numbers = #tpu.dot_dimension_numbers<[1], [0], [0], [1], [0, 0, 1, 1], [], []>} : vector<8x16xf32>, vector<16x128xf32>, vector<8x128xf32> -> vector<8x128xf32>
    %c0_3 = arith.constant 0 : index
    %c0_4 = arith.constant 0 : index
    %3 = vector.load %arg3[%c0_3, %c0_4] : memref<1x128xf32, #tpu.memory_space<vmem>>, vector<1x128xf32>
    %4 = vector.broadcast %3 : vector<1x128xf32> to vector<8x128xf32>
    %5 = arith.addf %2, %4 : vector<8x128xf32>
    %6 = math.tanh %5 : vector<8x128xf32>
    %c0_5 = arith.constant 0 : index
    %c0_6 = arith.constant 0 : index
    %7 = vector.load %arg4[%c0_5, %c0_6] : memref<128x8xf32, #tpu.memory_space<vmem>>, vector<128x8xf32>
    %cst_7 = arith.constant dense<0.000000e+00> : vector<8x8xf32>
    %8 = tpu.matmul %6, %7, %cst_7 {dimension_numbers = #tpu.dot_dimension_numbers<[1], [0], [0], [1], [0, 0, 1, 1], [], []>} : vector<8x128xf32>, vector<128x8xf32>, vector<8x8xf32> -> vector<8x8xf32>
    %c0_8 = arith.constant 0 : index
    %c0_9 = arith.constant 0 : index
    %9 = vector.load %arg5[%c0_8, %c0_9] : memref<1x8xf32, #tpu.memory_space<vmem>>, vector<1x8xf32>
    %10 = vector.broadcast %9 : vector<1x8xf32> to vector<8x8xf32>
    %11 = arith.addf %8, %10 : vector<8x8xf32>
    %12 = math.tanh %11 : vector<8x8xf32>
    %c0_10 = arith.constant 0 : index
    %c0_11 = arith.constant 0 : index
    %13 = vector.load %arg6[%c0_10, %c0_11] : memref<8x8xf32, #tpu.memory_space<vmem>>, vector<8x8xf32>
    tpu.vector_store %arg6[%c0_10, %c0_11], %12 {strides = array<i32>} : memref<8x8xf32, #tpu.memory_space<vmem>>, vector<8x8xf32>,
    return
  }
  func.func @transform_0(%arg0: i32) -> (i32, i32) {
    %c0_i32 = arith.constant 0 : i32
    %c0_i32_0 = arith.constant 0 : i32
    return %arg0, %c0_i32 : i32, i32
  }
  func.func @transform_1(%arg0: i32) -> (i32, i32) {
    %c0_i32 = arith.constant 0 : i32
    %c0_i32_0 = arith.constant 0 : i32
    %c0_i32_1 = arith.constant 0 : i32
    return %c0_i32, %c0_i32_0 : i32, i32
  }
  func.func @transform_2(%arg0: i32) -> (i32, i32) {
    %c0_i32 = arith.constant 0 : i32
    %c0_i32_0 = arith.constant 0 : i32
    %c0_i32_1 = arith.constant 0 : i32
    return %c0_i32, %c0_i32_0 : i32, i32
  }
  func.func @transform_3(%arg0: i32) -> (i32, i32) {
    %c0_i32 = arith.constant 0 : i32
    %c0_i32_0 = arith.constant 0 : i32
    %c0_i32_1 = arith.constant 0 : i32
    return %c0_i32, %c0_i32_0 : i32, i32
  }
  func.func @transform_4(%arg0: i32) -> (i32, i32) {
    %c0_i32 = arith.constant 0 : i32
    %c0_i32_0 = arith.constant 0 : i32
    %c0_i32_1 = arith.constant 0 : i32
    return %c0_i32, %c0_i32_0 : i32, i32
  }
  func.func @transform_5(%arg0: i32) -> (i32, i32) {
    %c0_i32 = arith.constant 0 : i32
    %c0_i32_0 = arith.constant 0 : i32
    return %arg0, %c0_i32 : i32, i32
  }
}

</mosaic_0001>

<bundles_post_ra>
// kernel: brain_forward.1
= control target key start
LH: loop header
LB: loop body
LE: loop exit
PB: predicated region body
PF: predicated region fallthrough
CT: control target
= control target key end

     0   :  { %v276_v0 = vmov 0.0   ;;  %vm277_vm0 = vmmov 0   ;;  %vm30_vm1 = vcmask 130048   ;;  %vm199_vm2 = vcmask 64512   ;;  %s376_s1 = inlined_call_operand.vmem [shape: f32[16,128], index: 1, kind: input, shape index: {}]   ;;  %s377_s0 = inlined_call_operand.vmem [shape: f32[8,16], index: 0, kind: input, shape index: {}]   ;;  %s378_s3 = inlined_call_operand.vmem [shape: f32[128,8], index: 3, kind: input, shape index: {}]   ;;  %s379_s2 = inlined_call_operand.vmem [shape: f32[1,128], index: 2, kind: input, shape index: {}]   ;;  %s380_s4 = inlined_call_operand.vmem [shape: f32[1,8], index: 4, kind: input, shape index: {}]   ;;  %s381_s5 = inlined_call_operand.vmem [shape: f32[8,8], index: 5, kind: output, shape index: {}]  }
   0x1   :  { %228 = vmatprep.subr.mxu0 %v276_v0  ;;  %v22_v1 = vld [vmem:[%s376_s1 + $0x8] sm:$0xff]  ;;  %v21_v2 = vld [vmem:[%s376_s1] sm:$0xff]  ;;  %232 = vmatprep.mubr.msk.f32.mxu0 %vm277_vm0, %v276_v0  ;;  %v120_v4 = vld [vmem:[%s378_s3 + $0x78] sm:$0xff] }
   0x2   :  { %229 = vmatpush3.msra.mxu0 %v22_v1  ;;  %v20_v3 = vld [vmem:[%s377_s0] sm:$0xff]  ;;  %235 = vmatprep.subr.mxu1 %v276_v0  ;;  %v119_v5 = vld [vmem:[%s378_s3 + $0x70] sm:$0xff]  ;;  %v118_v6 = vld [vmem:[%s378_s3 + $0x68] sm:$0xff] }
   0x3   :  { %230 = vmatprep.subr.mxu0 %v276_v0  ;;  %236 = vmatpush3.msra.mxu1 %v120_v4  ;;  %v117_v7 = vld [vmem:[%s378_s3 + $0x60] sm:$0xff]  ;;  %v116_v8 = vld [vmem:[%s378_s3 + $0x58] sm:$0xff]  ;;  %v115_v9 = vld [vmem:[%s378_s3 + $0x50] sm:$0xff] }
   0x4   :  { %231 = vmatpush3.msra.mxu0 %v21_v2  ;;  %237 = vmatprep.subr.mxu1 %v276_v0  ;;  %v114_v10 = vld [vmem:[%s378_s3 + $0x48] sm:$0xff]  ;;  %v113_v11 = vld [vmem:[%s378_s3 + $0x40] sm:$0xff]  ;;  %v112_v12 = vld [vmem:[%s378_s3 + $0x38] sm:$0xff] }
   0x5   :  { %233 = vmatmul.mubr.msk.f32.vlgmr.msra.gmra.mxu0 %vm30_vm1, %v20_v3  ;;  %238 = vmatpush3.msra.mxu1 %v119_v5  ;;  %v111_v13 = vld [vmem:[%s378_s3 + $0x30] sm:$0xff]  ;;  %v110_v14 = vld [vmem:[%s378_s3 + $0x28] sm:$0xff]  ;;  %v109_v15 = vld [vmem:[%s378_s3 + $0x20] sm:$0xff] }
   0x6   :  { %239 = vmatprep.subr.mxu1 %v276_v0  ;;  %267 = vmatprep.mubr.msk.f32.mxu1 %vm277_vm0, %v276_v0  ;;  %v108_v16 = vld [vmem:[%s378_s3 + $0x18] sm:$0xff]  ;;  %v107_v17 = vld [vmem:[%s378_s3 + $0x10] sm:$0xff]  ;;  %v106_v18 = vld [vmem:[%s378_s3 + $0x8] sm:$0xff] }
   0x7   :  { %240 = vmatpush3.msra.mxu1 %v118_v6  ;;  %v105_v19 = vld [vmem:[%s378_s3] sm:$0xff] }
   0x8   :  { %241 = vmatprep.subr.mxu1 %v276_v0  ;;  %v205_v20 = vld [vmem:[%s379_s2] ss:$0 sm:$0xff] }
   0x9   :  { %242 = vmatpush3.msra.mxu1 %v117_v7  ;;  %v207_v25 = vld [vmem:[%s380_s4] ss:$0 sm:$0xff] }
   0xa   :  { %243 = vmatprep.subr.mxu1 %v276_v0 }
   0xb   :  { %244 = vmatpush3.msra.mxu1 %v116_v8 }
   0xc   :  { %245 = vmatprep.subr.mxu1 %v276_v0 }
   0xd   :  { %246 = vmatpush3.msra.mxu1 %v115_v9 }
   0xe   :  { %247 = vmatprep.subr.mxu1 %v276_v0 }
   0xf   :  { %248 = vmatpush3.msra.mxu1 %v114_v10 }
  0x10   :  { %249 = vmatprep.subr.mxu1 %v276_v0 }
  0x11   :  { %250 = vmatpush3.msra.mxu1 %v113_v11 }
  0x12   :  { %251 = vmatprep.subr.mxu1 %v276_v0 }
  0x13   :  { %252 = vmatpush3.msra.mxu1 %v112_v12 }
  0x14   :  { %253 = vmatprep.subr.mxu1 %v276_v0 }
  0x15   :  { %254 = vmatpush3.msra.mxu1 %v111_v13 }
  0x16   :  { %255 = vmatprep.subr.mxu1 %v276_v0 }
  0x17   :  { %256 = vmatpush3.msra.mxu1 %v110_v14 }
  0x18   :  { %257 = vmatprep.subr.mxu1 %v276_v0 }
  0x19   :  { %258 = vmatpush3.msra.mxu1 %v109_v15 }
  0x1a   :  { %259 = vmatprep.subr.mxu1 %v276_v0 }
  0x1b   :  { %260 = vmatpush3.msra.mxu1 %v108_v16 }
  0x1c   :  { %261 = vmatprep.subr.mxu1 %v276_v0 }
  0x1d   :  { %262 = vmatpush3.msra.mxu1 %v107_v17 }
  0x1e   :  { %263 = vmatprep.subr.mxu1 %v276_v0 }
  0x1f   :  { %264 = vmatpush3.msra.mxu1 %v106_v18 }
  0x20   :  { %265 = vmatprep.subr.mxu1 %v276_v0 }
  0x21   :  { %266 = vmatpush3.msra.mxu1 %v105_v19 }
  0xc5   :  { %v100_v21 = vpop.f32.mrf.mxu0 }
  0xc6   :  { %v101_v22 = vadd.f32 %v205_v20, %v100_v21 }
  0xc7   :  { %v234_v23 = vpop.f32.mrf.mxu0 }
  0xc8   :  { %272 = vtanh.f32 %v101_v22 }
  0xd5   :  { %v273_v24 = vpop.eup %272 }
  0xd6   :  { %268 = vmatmul.mubr.f32.vlgmr.msra.gmra.mxu1 %v273_v24 }
 0x196   :  { %v194_v26 = vpop.f32.mrf.mxu1 }
 0x197   :  { %v195_v27 = vadd.f32 %v207_v25, %v194_v26 }
 0x198   :  { %v269_v28 = vpop.f32.mrf.mxu1 }
 0x199   :  { %274 = vtanh.f32 %v195_v27 }
 0x1a6   :  { %v275_v29 = vpop.eup %274 }
 0x1a7   :  { %200 = vst.msk [vmem:[%s381_s5] sm:$0xff] %vm199_vm2, %v275_v29 }

</bundles_post_ra>
